<compile_context>
chip_gen: v7x
topology: tpu7x:2x2x1
jax: 0.10.0
libtpu: 0.0.40
codegen_flags: <defaults>
</compile_context>

<pallas_src>
import numpy as np
import jax
import jax.numpy as jnp
from jax.experimental import pallas as pl
from jax.experimental.pallas import tpu as pltpu


def _round_up(x, m):
    return ((x + m - 1) // m) * m


def _rel_union_kernel(sbj_ref, obj_ref, rel_ref):
    # sbj_ref: (5, TILE_I, 1)  planar subject ROIs (rows of this subject tile, transposed)
    # obj_ref: (5, 1, N)       planar object ROIs (all detections, resident across grid)
    # rel_ref: (5, TILE_I, N)  planar union ROIs
    ti = sbj_ref.shape[1]
    n = obj_ref.shape[2]
    # plane 0: subject batch index, lane-broadcast across all objects
    rel_ref[0] = jnp.broadcast_to(sbj_ref[0], (ti, n))
    # planes 1,2 (x1, y1): elementwise min of subject vs object  (lane x sublane broadcast)
    rel_ref[1] = jnp.minimum(sbj_ref[1], obj_ref[1])
    rel_ref[2] = jnp.minimum(sbj_ref[2], obj_ref[2])
    # planes 3,4 (x2, y2): elementwise max
    rel_ref[3] = jnp.maximum(sbj_ref[3], obj_ref[3])
    rel_ref[4] = jnp.maximum(sbj_ref[4], obj_ref[4])


def _choose_tile_i(n):
    """Largest power-of-two subject tile <= 128 whose double-buffered
    (5, TILE_I, N) f32 output block stays well under the scoped VMEM default
    (fits v7x's smaller 64 MiB VMEM as well)."""
    budget = 12 * 1024 * 1024
    t = 128
    while t > 8 and 2 * 5 * t * max(n, 1) * 4 > budget:
        t //= 2
    return max(t, 8)


def _pallas_rel_union(det_rois):
    """rois_union for all n*n ordered pairs, returned planar as (5, n, n)."""
    n = det_rois.shape[0]
    rois_t = det_rois.astype(jnp.float32).T                 # (5, n)

    tile_i = min(_choose_tile_i(n), _round_up(n, 8))
    n_pad = _round_up(n, tile_i)

    # Subject side: planar (5, n_pad, 1); padded rows are sliced off afterwards.
    sbj_planar = jnp.pad(rois_t.reshape(5, n, 1),
                         ((0, 0), (0, n_pad - n), (0, 0)))
    # Object side: planar (5, 1, n), stays resident across the grid.
    obj_planar = rois_t.reshape(5, 1, n)

    rel_planar = pl.pallas_call(
        _rel_union_kernel,
        out_shape=jax.ShapeDtypeStruct((5, n_pad, n), jnp.float32),
        grid=(n_pad // tile_i,),
        in_specs=[
            pl.BlockSpec((5, tile_i, 1), lambda i: (0, i, 0)),
            pl.BlockSpec((5, 1, n), lambda i: (0, 0, 0)),
        ],
        out_specs=pl.BlockSpec((5, tile_i, n), lambda i: (0, i, 0)),
        compiler_params=pltpu.CompilerParams(
            dimension_semantics=("parallel",)),
    )(sbj_planar, obj_planar)

    return rel_planar[:, :n, :]                              # (5, n, n)


def single_scale_pairs_pn_outputs_forward(det_rois, det_labels, det_scores,
                                          im_info, dataset_name=None,
                                          roidb=None, overlap=False):
    """JAX/Pallas port of single_scale_pairs_pn_outputs.forward (overlap=False)."""
    n = int(det_rois.shape[0])

    # Static pair indices (np.repeat / np.tile) + self-pair removal, as in PyTorch.
    sbj_inds = np.repeat(np.arange(n), n)
    obj_inds = np.tile(np.arange(n), n)
    if n > 1:
        mask = np.ones(n * n, dtype=bool)
        mask[np.arange(n) * (n + 1)] = False      # drop (i, i) at flat index i*(n+1)
        keeps = np.where(mask)[0]
        sbj_inds = sbj_inds[keeps]
        obj_inds = obj_inds[keeps]

    # TODO(synk): overlap=True branch (box_utils_rel.bbox_pair_overlaps + dynamic
    # filtering on overlap in (0, 0.5)) not implemented (data-dependent compaction);
    # im_scale is only consumed there, so we avoid any host sync on im_info.

    det_rois_f = jnp.asarray(det_rois, dtype=jnp.float32)

    # --- per-pair compute (rois_union) in the Pallas kernel, planar layout ---
    rel_planar = _pallas_rel_union(det_rois_f)               # (5, n, n)
    rel_flat = rel_planar.reshape(5, n * n)
    if n > 1:
        # Off-diagonal trick: drop the (i, i) self-pairs with a slice/reshape
        # (same ordering as the `keeps` index list, no gather pass).
        rel_kept = (rel_flat[:, :-1]
                    .reshape(5, n - 1, n + 1)[:, :, 1:]
                    .reshape(5, n * n - n))
    else:
        rel_kept = rel_flat
    rel_rois = rel_kept.T                                     # (M, 5)

    # --- pure repeat/tile outputs: plain gathers on the small (n, *) inputs ---
    sbj_idx = jnp.asarray(sbj_inds, dtype=jnp.int32)
    obj_idx = jnp.asarray(obj_inds, dtype=jnp.int32)
    det_labels_j = jnp.asarray(det_labels)
    det_scores_j = jnp.asarray(det_scores)
    sbj_rois = det_rois_f[sbj_idx]
    obj_rois = det_rois_f[obj_idx]
    sbj_labels = det_labels_j[sbj_idx]
    obj_labels = det_labels_j[obj_idx]
    sbj_scores = det_scores_j[sbj_idx]
    obj_scores = det_scores_j[obj_idx]

    return_dict = {
        'det_rois': det_rois,
        'sbj_inds': sbj_inds,
        'obj_inds': obj_inds,
        'sbj_rois': sbj_rois,
        'obj_rois': obj_rois,
        'rel_rois': rel_rois,
        'sbj_labels': sbj_labels,
        'obj_labels': obj_labels,
        'sbj_scores': sbj_scores,
        'obj_scores': obj_scores,
        'fg_size': np.array([sbj_inds.shape[0]], dtype=np.int32),
    }
    # TODO(synk): FPN multilevel ROI distribution (cfg.FPN.FPN_ON path) skipped —
    # this is the single-scale (no FPN) head.
    return return_dict


if __name__ == "__main__":
    key = jax.random.PRNGKey(0)
    n = 10  # number of detections (non-multiple of 8 to exercise subject-tile padding)
    k1, k2, k3, k4 = jax.random.split(key, 4)

    xy1 = jax.random.uniform(k1, (n, 2), minval=0.0, maxval=200.0)
    wh = jax.random.uniform(k2, (n, 2), minval=8.0, maxval=120.0)
    xy2 = xy1 + wh
    det_rois = jnp.concatenate(
        [jnp.zeros((n, 1), jnp.float32), xy1, xy2], axis=1).astype(jnp.float32)
    det_labels = jax.random.randint(k3, (n,), 1, 11, dtype=jnp.int32)
    det_scores = jax.random.uniform(k4, (n,), minval=0.0, maxval=1.0).astype(jnp.float32)
    im_info = jnp.array([[600.0, 800.0, 1.5]], dtype=jnp.float32)

    out = single_scale_pairs_pn_outputs_forward(
        det_rois, det_labels, det_scores, im_info, dataset_name="vg")
    jax.block_until_ready([v for v in out.values() if isinstance(v, jax.Array)])

    # ---- numpy reference (mirrors the PyTorch forward semantics) ----
    dr = np.asarray(det_rois)
    dl = np.asarray(det_labels)
    ds = np.asarray(det_scores)
    si = np.repeat(np.arange(n), n)
    oi = np.tile(np.arange(n), n)
    mask = np.ones(n * n, dtype=bool)
    mask[np.arange(n) * (n + 1)] = False
    kp = np.where(mask)[0]
    si, oi = si[kp], oi[kp]
    sr, orr = dr[si], dr[oi]
    rel_ref = np.hstack([
        sr[:, :1],
        np.minimum(sr[:, 1:2], orr[:, 1:2]),
        np.minimum(sr[:, 2:3], orr[:, 2:3]),
        np.maximum(sr[:, 3:4], orr[:, 3:4]),
        np.maximum(sr[:, 4:5], orr[:, 4:5]),
    ])

    assert np.array_equal(np.asarray(out['sbj_inds']), si)
    assert np.array_equal(np.asarray(out['obj_inds']), oi)
    assert np.allclose(np.asarray(out['sbj_rois']), sr)
    assert np.allclose(np.asarray(out['obj_rois']), orr)
    assert np.allclose(np.asarray(out['rel_rois']), rel_ref)
    assert np.array_equal(np.asarray(out['sbj_labels']), dl[si])
    assert np.array_equal(np.asarray(out['obj_labels']), dl[oi])
    assert np.allclose(np.asarray(out['sbj_scores']), ds[si])
    assert np.allclose(np.asarray(out['obj_scores']), ds[oi])
    assert int(out['fg_size'][0]) == sr.shape[0] == n * n - n

    print("KERNEL_OK")
</pallas_src>

<mosaic_0001>
module attributes {stable_mosaic.version = 11 : i64} {
  func.func @_rel_union_kernel(%arg0: i32, %arg1: memref<5x16x1xf32, #tpu.memory_space<vmem>>, %arg2: memref<5x1x10xf32, #tpu.memory_space<vmem>>, %arg3: memref<5x16x10xf32, #tpu.memory_space<vmem>>) attributes {dimension_semantics = [#tpu.dimension_semantics<parallel>], iteration_bounds = array<i64: 1>, scalar_prefetch = 0 : i64, scratch_operands = 0 : i64, tpu.core_type = #tpu.core_type<tc>, window_params = [{transform_indices = @transform_0, window_bounds = array<i64: 5, 16, 1>}, {pipeline_mode = #tpu.pipeline_mode<synchronous>, transform_indices = @transform_1, window_bounds = array<i64: 5, 1, 10>}, {transform_indices = @transform_2, window_bounds = array<i64: 5, 16, 10>}]} {
    %c0 = arith.constant 0 : index
    %c0_0 = arith.constant 0 : index
    %c0_1 = arith.constant 0 : index
    %0 = vector.load %arg1[%c0, %c0_0, %c0_1] : memref<5x16x1xf32, #tpu.memory_space<vmem>>, vector<1x16x1xf32>
    %1 = vector.shape_cast %0 : vector<1x16x1xf32> to vector<16x1xf32>
    %2 = vector.shape_cast %1 : vector<16x1xf32> to vector<16x1xf32>
    %3 = vector.broadcast %2 : vector<16x1xf32> to vector<16x10xf32>
    %c0_2 = arith.constant 0 : index
    %c0_3 = arith.constant 0 : index
    %c0_4 = arith.constant 0 : index
    %4 = vector.load %arg3[%c0_2, %c0_3, %c0_4] : memref<5x16x10xf32, #tpu.memory_space<vmem>>, vector<1x16x10xf32>
    %5 = vector.shape_cast %4 : vector<1x16x10xf32> to vector<16x10xf32>
    %6 = vector.shape_cast %3 : vector<16x10xf32> to vector<1x16x10xf32>
    tpu.vector_store %arg3[%c0_2, %c0_3, %c0_4], %6 {strides = array<i32>} : memref<5x16x10xf32, #tpu.memory_space<vmem>>, vector<1x16x10xf32>,
    %c1 = arith.constant 1 : index
    %c0_5 = arith.constant 0 : index
    %c0_6 = arith.constant 0 : index
    %7 = vector.load %arg1[%c1, %c0_5, %c0_6] : memref<5x16x1xf32, #tpu.memory_space<vmem>>, vector<1x16x1xf32>
    %8 = vector.shape_cast %7 : vector<1x16x1xf32> to vector<16x1xf32>
    %c1_7 = arith.constant 1 : index
    %c0_8 = arith.constant 0 : index
    %c0_9 = arith.constant 0 : index
    %9 = vector.load %arg2[%c1_7, %c0_8, %c0_9] : memref<5x1x10xf32, #tpu.memory_space<vmem>>, vector<1x1x10xf32>
    %10 = vector.shape_cast %9 : vector<1x1x10xf32> to vector<1x10xf32>
    %11 = vector.broadcast %8 : vector<16x1xf32> to vector<16x10xf32>
    %12 = vector.broadcast %10 : vector<1x10xf32> to vector<16x10xf32>
    %13 = arith.minimumf %11, %12 : vector<16x10xf32>
    %c1_10 = arith.constant 1 : index
    %c0_11 = arith.constant 0 : index
    %c0_12 = arith.constant 0 : index
    %14 = vector.load %arg3[%c1_10, %c0_11, %c0_12] : memref<5x16x10xf32, #tpu.memory_space<vmem>>, vector<1x16x10xf32>
    %15 = vector.shape_cast %14 : vector<1x16x10xf32> to vector<16x10xf32>
    %16 = vector.shape_cast %13 : vector<16x10xf32> to vector<1x16x10xf32>
    tpu.vector_store %arg3[%c1_10, %c0_11, %c0_12], %16 {strides = array<i32>} : memref<5x16x10xf32, #tpu.memory_space<vmem>>, vector<1x16x10xf32>,
    %c2 = arith.constant 2 : index
    %c0_13 = arith.constant 0 : index
    %c0_14 = arith.constant 0 : index
    %17 = vector.load %arg1[%c2, %c0_13, %c0_14] : memref<5x16x1xf32, #tpu.memory_space<vmem>>, vector<1x16x1xf32>
    %18 = vector.shape_cast %17 : vector<1x16x1xf32> to vector<16x1xf32>
    %c2_15 = arith.constant 2 : index
    %c0_16 = arith.constant 0 : index
    %c0_17 = arith.constant 0 : index
    %19 = vector.load %arg2[%c2_15, %c0_16, %c0_17] : memref<5x1x10xf32, #tpu.memory_space<vmem>>, vector<1x1x10xf32>
    %20 = vector.shape_cast %19 : vector<1x1x10xf32> to vector<1x10xf32>
    %21 = vector.broadcast %18 : vector<16x1xf32> to vector<16x10xf32>
    %22 = vector.broadcast %20 : vector<1x10xf32> to vector<16x10xf32>
    %23 = arith.minimumf %21, %22 : vector<16x10xf32>
    %c2_18 = arith.constant 2 : index
    %c0_19 = arith.constant 0 : index
    %c0_20 = arith.constant 0 : index
    %24 = vector.load %arg3[%c2_18, %c0_19, %c0_20] : memref<5x16x10xf32, #tpu.memory_space<vmem>>, vector<1x16x10xf32>
    %25 = vector.shape_cast %24 : vector<1x16x10xf32> to vector<16x10xf32>
    %26 = vector.shape_cast %23 : vector<16x10xf32> to vector<1x16x10xf32>
    tpu.vector_store %arg3[%c2_18, %c0_19, %c0_20], %26 {strides = array<i32>} : memref<5x16x10xf32, #tpu.memory_space<vmem>>, vector<1x16x10xf32>,
    %c3 = arith.constant 3 : index
    %c0_21 = arith.constant 0 : index
    %c0_22 = arith.constant 0 : index
    %27 = vector.load %arg1[%c3, %c0_21, %c0_22] : memref<5x16x1xf32, #tpu.memory_space<vmem>>, vector<1x16x1xf32>
    %28 = vector.shape_cast %27 : vector<1x16x1xf32> to vector<16x1xf32>
    %c3_23 = arith.constant 3 : index
    %c0_24 = arith.constant 0 : index
    %c0_25 = arith.constant 0 : index
    %29 = vector.load %arg2[%c3_23, %c0_24, %c0_25] : memref<5x1x10xf32, #tpu.memory_space<vmem>>, vector<1x1x10xf32>
    %30 = vector.shape_cast %29 : vector<1x1x10xf32> to vector<1x10xf32>
    %31 = vector.broadcast %28 : vector<16x1xf32> to vector<16x10xf32>
    %32 = vector.broadcast %30 : vector<1x10xf32> to vector<16x10xf32>
    %33 = arith.maximumf %31, %32 : vector<16x10xf32>
    %c3_26 = arith.constant 3 : index
    %c0_27 = arith.constant 0 : index
    %c0_28 = arith.constant 0 : index
    %34 = vector.load %arg3[%c3_26, %c0_27, %c0_28] : memref<5x16x10xf32, #tpu.memory_space<vmem>>, vector<1x16x10xf32>
    %35 = vector.shape_cast %34 : vector<1x16x10xf32> to vector<16x10xf32>
    %36 = vector.shape_cast %33 : vector<16x10xf32> to vector<1x16x10xf32>
    tpu.vector_store %arg3[%c3_26, %c0_27, %c0_28], %36 {strides = array<i32>} : memref<5x16x10xf32, #tpu.memory_space<vmem>>, vector<1x16x10xf32>,
    %c4 = arith.constant 4 : index
    %c0_29 = arith.constant 0 : index
    %c0_30 = arith.constant 0 : index
    %37 = vector.load %arg1[%c4, %c0_29, %c0_30] : memref<5x16x1xf32, #tpu.memory_space<vmem>>, vector<1x16x1xf32>
    %38 = vector.shape_cast %37 : vector<1x16x1xf32> to vector<16x1xf32>
    %c4_31 = arith.constant 4 : index
    %c0_32 = arith.constant 0 : index
    %c0_33 = arith.constant 0 : index
    %39 = vector.load %arg2[%c4_31, %c0_32, %c0_33] : memref<5x1x10xf32, #tpu.memory_space<vmem>>, vector<1x1x10xf32>
    %40 = vector.shape_cast %39 : vector<1x1x10xf32> to vector<1x10xf32>
    %41 = vector.broadcast %38 : vector<16x1xf32> to vector<16x10xf32>
    %42 = vector.broadcast %40 : vector<1x10xf32> to vector<16x10xf32>
    %43 = arith.maximumf %41, %42 : vector<16x10xf32>
    %c4_34 = arith.constant 4 : index
    %c0_35 = arith.constant 0 : index
    %c0_36 = arith.constant 0 : index
    %44 = vector.load %arg3[%c4_34, %c0_35, %c0_36] : memref<5x16x10xf32, #tpu.memory_space<vmem>>, vector<1x16x10xf32>
    %45 = vector.shape_cast %44 : vector<1x16x10xf32> to vector<16x10xf32>
    %46 = vector.shape_cast %43 : vector<16x10xf32> to vector<1x16x10xf32>
    tpu.vector_store %arg3[%c4_34, %c0_35, %c0_36], %46 {strides = array<i32>} : memref<5x16x10xf32, #tpu.memory_space<vmem>>, vector<1x16x10xf32>,
    return
  }
  func.func @transform_0(%arg0: i32) -> (i32, i32, i32) {
    %c0_i32 = arith.constant 0 : i32
    %c0_i32_0 = arith.constant 0 : i32
    %c0_i32_1 = arith.constant 0 : i32
    return %c0_i32, %arg0, %c0_i32_0 : i32, i32, i32
  }
  func.func @transform_1(%arg0: i32) -> (i32, i32, i32) {
    %c0_i32 = arith.constant 0 : i32
    %c0_i32_0 = arith.constant 0 : i32
    %c0_i32_1 = arith.constant 0 : i32
    %c0_i32_2 = arith.constant 0 : i32
    return %c0_i32, %c0_i32_0, %c0_i32_1 : i32, i32, i32
  }
  func.func @transform_2(%arg0: i32) -> (i32, i32, i32) {
    %c0_i32 = arith.constant 0 : i32
    %c0_i32_0 = arith.constant 0 : i32
    %c0_i32_1 = arith.constant 0 : i32
    return %c0_i32, %arg0, %c0_i32_0 : i32, i32, i32
  }
}

</mosaic_0001>

<bundles_post_ra>
// kernel: tpu_custom_call.1
= control target key start
LH: loop header
LB: loop body
LE: loop exit
PB: predicated region body
PF: predicated region fallthrough
CT: control target
= control target key end

     0   :  { %v193_v2 = vmov 0   ;;  %s276_s0 = inlined_call_operand.vmem [shape: f32[5,16,1], index: 0, kind: input, shape index: {}]   ;;  %s277_s1 = inlined_call_operand.vmem [shape: f32[5,1,10], index: 1, kind: input, shape index: {}]   ;;  %s278_s2 = inlined_call_operand.hbm [shape: f32[5,16,10], index: 2, kind: output, shape index: {}]  }
   0x1   :  { %v151_v0 = vld [vmem:[%s276_s0 + $0x20] sm:$0xff]  ;;  %v147_v1 = vld [vmem:[%s276_s0 + $0x10] sm:$0xff]  ;;  %168 = vset.pattern.permute.xlu1 %v193_v2  ;;  %167 = vset.pattern.permute.xlu0 %v193_v2  ;;  %v152_v3 = vld [vmem:[%s276_s0 + $0x28] sm:$0xff] }
   0x2   :  { %60 = vperm.xlu1 %168, %v151_v0   ;;  %34 = vperm.xlu0 %167, %v147_v1   ;;  %v148_v4 = vld [vmem:[%s276_s0 + $0x18] sm:$0xff] }
   0x3   :  { %7 = vsyncpa [#allocation3], 0  ;;  %v156_v5 = vld [vmem:[%s276_s0 + $0x38] sm:$0xff]  ;;  %v155_v6 = vld [vmem:[%s276_s0 + $0x30] sm:$0xff]  ;;  %vm24_vm0 = vcmask 80896   ;;  %s194_s8 = smov [#allocation2]  }
   0x4   :  { %v160_v7 = vld [vmem:[%s276_s0 + $0x48] sm:$0xff]  ;;  %v159_v8 = vld [vmem:[%s276_s0 + $0x40] sm:$0xff]  ;;  %s136_s9 = sshll.u32 %s194_s8, 4  ;;  %s137_s9 = int_to_ptr.vmem [resolvable:$true] %s136_s9 }
   0x5   :  { %v13_v9 = vld [vmem:[%s276_s0 + $0x8] sm:$0xff]  ;;  %v12_v10 = vld [vmem:[%s276_s0] sm:$0xff]  ;;  %p174_p1 = scmp.lt.s32.totalorder %s137_s9, %s137_s9 }
   0x6   :  { %65 = vperm.xlu1 %168, %v152_v3   ;;  %39 = vperm.xlu0 %167, %v148_v4   ;;  %v154_v11 = vld [vmem:[%s277_s1 + $0x2] ss:$0 sm:$0xff]  ;;  %v150_v12 = vld [vmem:[%s277_s1 + $0x1] ss:$0 sm:$0xff]  ;;  %v158_v21 = vld [vmem:[%s277_s1 + $0x3] ss:$0 sm:$0xff] }
   0x7   :  { %v162_v26 = vld [vmem:[%s277_s1 + $0x4] ss:$0 sm:$0xff]  ;;  %s169_s1 = scalar_lea.vmem %s137_s9, 1280 }
   0x8   :  { %p170_p0 = scmp.ne.s32.totalorder %s137_s9, %s169_s1  ;;  %p175_p2 = scmp.lt.s32.totalorder %s169_s1, %s169_s1 }
   0xa   :  { %91 = vperm.xlu1 %168, %v156_v5   ;;  %86 = vperm.xlu0 %167, %v155_v6   ;;  %p176_p3 = por %p175_p2, %p174_p1 }
   0xc   :  { %p177_p4 = pnand %p176_p3, %p170_p0 }
   0xe   :  { %117 = vperm.xlu1 %168, %v160_v7   ;;  %112 = vperm.xlu0 %167, %v159_v8  }
  0x12   :  { %21 = vperm.xlu1 %168, %v13_v9   ;;  %16 = vperm.xlu0 %167, %v12_v10  }
  0x81   :  { %v61_v13 = vpop.permute.xlu1 %60  ;;  %v35_v14 = vpop.permute.xlu0 %34 }
  0x82   :  { %v74_v15 = vmin.f32 %v61_v13, %v154_v11  ;;  %v48_v16 = vmin.f32 %v35_v14, %v150_v12 }
  0x84   :  { %77 = vst.msk [vmem:[#allocation2 + $0x20] sm:$0xff] %vm24_vm0, %v74_v15  ;;  %51 = vst.msk [vmem:[#allocation2 + $0x10] sm:$0xff] %vm24_vm0, %v48_v16 }
  0x85   :  { %v66_v17 = vpop.permute.xlu1 %65  ;;  %v40_v18 = vpop.permute.xlu0 %39 }
  0x86   :  { %v75_v19 = vmin.f32 %v66_v17, %v154_v11  ;;  %v49_v20 = vmin.f32 %v40_v18, %v150_v12 }
  0x88   :  { %78 = vst.msk [vmem:[#allocation2 + $0x28] sm:$0xff] %vm24_vm0, %v75_v19  ;;  %52 = vst.msk [vmem:[#allocation2 + $0x18] sm:$0xff] %vm24_vm0, %v49_v20 }
  0x89   :  { %v92_v22 = vpop.permute.xlu1 %91  ;;  %v87_v23 = vpop.permute.xlu0 %86 }
  0x8a   :  { %v101_v24 = vmax.f32 %v92_v22, %v158_v21  ;;  %v100_v25 = vmax.f32 %v87_v23, %v158_v21 }
  0x8c   :  { %104 = vst.msk [vmem:[#allocation2 + $0x38] sm:$0xff] %vm24_vm0, %v101_v24  ;;  %103 = vst.msk [vmem:[#allocation2 + $0x30] sm:$0xff] %vm24_vm0, %v100_v25 }
  0x8d   :  { %v118_v27 = vpop.permute.xlu1 %117  ;;  %v113_v28 = vpop.permute.xlu0 %112 }
  0x8e   :  { %v127_v29 = vmax.f32 %v118_v27, %v162_v26  ;;  %v126_v30 = vmax.f32 %v113_v28, %v162_v26 }
  0x90   :  { %130 = vst.msk [vmem:[#allocation2 + $0x48] sm:$0xff] %vm24_vm0, %v127_v29  ;;  %129 = vst.msk [vmem:[#allocation2 + $0x40] sm:$0xff] %vm24_vm0, %v126_v30 }
  0x91   :  { %v22_v31 = vpop.permute.xlu1 %21  ;;  %v17_v32 = vpop.permute.xlu0 %16 }
  0x92   :  { %26 = vst.msk [vmem:[#allocation2 + $0x8] sm:$0xff] %vm24_vm0, %v22_v31  ;;  %25 = vst.msk [vmem:[#allocation2] sm:$0xff] %vm24_vm0, %v17_v32 }
  0x93   :  { %180 = shalt.err (!%p177_p4)
}
  0x94   :  { %s181_s12 = scalar_lea.hbm %s278_s2, 1280 }
  0x95   :  { %p182_p5 = scmp.ne.s32.totalorder %s278_s2, %s181_s12  ;;  %p185_p6 = scmp.lt.u32.totalorder %s181_s12, %s278_s2 }
  0x97   :  { %p187_p7 = pnand %p185_p6, %p182_p5 }
  0x99   :  { %190 = shalt.err (!%p187_p7)
}
  0x9a   :  { %s195_s17 = smov 128   ;;  %s196_s18 = smov 8  }
  0x9b   :  { %142 = dma.vmem_to_hbm [thread:$0]  %s137_s9, 1280, %s278_s2, [#allocation3], %s195_s17, %s195_s17, %s196_s18  }
  0x9c   :  { %191 = dma.done.wait [#allocation3], 1280  }
  0x9d   :  { %192 = vsyncadd [#allocation3], 4294966016 }
  0x9e   :  { %146 = vsyncpa [#allocation3], 1 }

</bundles_post_ra>
